<compile_context>
chip_gen: v5e
topology: v5e:2x2
jax: 0.10.0
libtpu: 0.0.40
codegen_flags: <defaults>
</compile_context>

<pallas_src>
import jax
import jax.numpy as jnp
from jax.experimental import pallas as pl
from jax.experimental.pallas import tpu as pltpu

_LANE = 128


def _round_up(x, m):
    return (x + m - 1) // m * m


def _pick_tile(m_cols, k, cout):
    """Largest lane-aligned pixel tile that keeps double-buffered blocks well inside VMEM."""
    try:
        vmem_bytes = pltpu.get_tpu_info().vmem_capacity_bytes  # 128 MiB v5e/v6e, 64 MiB v7x
    except Exception:
        vmem_bytes = 64 * 1024 * 1024
    budget = vmem_bytes // 16  # generous headroom: pipelining buffers + compiler scratch
    # per output-pixel bytes: 2x-buffered bf16 patches (4 pool positions x K) + 2x f32 out
    per_col = 2 * (4 * k * 2) + 2 * cout * 4
    tm = (budget // per_col) // _LANE * _LANE
    tm = max(_LANE, min(tm, 4096))
    return min(tm, _round_up(m_cols, _LANE))


# ---------------------------------------------------------------------------
# Pallas kernel: fused Conv3x3 (im2col matmul) + BN(folded) + ReLU + 2x2 MaxPool
# ---------------------------------------------------------------------------

def _conv_bn_relu_pool_kernel(p_ref, w_ref, b_ref, o_ref):
    """One tile of pooled output pixels.

    p_ref: (4, K, tm) bf16  im2col patches; axis 0 = 2x2 pool-window position,
           rows = (kernel-position, in-channel), cols = output pixels (lane-dense).
    w_ref: (Cout, K)  bf16  conv weights with BN scale folded in.
    b_ref: (Cout, 1)  f32   folded BN / conv bias.
    o_ref: (Cout, tm) f32   pooled activations (lane-dense, unmasked stores).
    """
    w = w_ref[...]
    b = b_ref[...]

    def branch(j):
        acc = jnp.dot(w, p_ref[j], preferred_element_type=jnp.float32)  # MXU, bf16 in / f32 acc
        return jnp.maximum(acc + b, 0.0)                                # BN bias + ReLU

    y = jnp.maximum(jnp.maximum(branch(0), branch(1)),
                    jnp.maximum(branch(2), branch(3)))                  # 2x2 max-pool
    o_ref[...] = y.astype(o_ref.dtype)


def conv_bn_relu_pool(patches, w_t, bias_col, tm):
    _, K, Mp = patches.shape
    Cout = w_t.shape[0]
    return pl.pallas_call(
        _conv_bn_relu_pool_kernel,
        out_shape=jax.ShapeDtypeStruct((Cout, Mp), jnp.float32),
        grid=(Mp // tm,),
        in_specs=[
            pl.BlockSpec((4, K, tm), lambda i: (0, 0, i)),
            pl.BlockSpec((Cout, K), lambda i: (0, 0)),
            pl.BlockSpec((Cout, 1), lambda i: (0, 0)),
        ],
        out_specs=pl.BlockSpec((Cout, tm), lambda i: (0, i)),
        compiler_params=pltpu.CompilerParams(
            dimension_semantics=("parallel",),
            vmem_limit_bytes=32 * 1024 * 1024,
        ),
    )(patches, w_t, bias_col)


# ---------------------------------------------------------------------------
# Glue: pool-grouped im2col (channel-major), parameter setup, backbone
# ---------------------------------------------------------------------------

def _im2col_pooled_t(x_cnhw):
    """im2col for 3x3/pad1 conv, grouped by 2x2 max-pool window position.

    x_cnhw: (Cin, N, H, W)  ->  (4, 9*Cin, N*Ho*Wo) with
      out[2*dh+dw, (kh*3+kw)*Cin + c, n*Ho*Wo + ho*Wo + wo]
        = x[c, n, 2*ho+dh+kh-1, 2*wo+dw+kw-1]   (zero padded).
    """
    Cin, N, H, W = x_cnhw.shape
    Ho, Wo = H // 2, W // 2
    xp = jnp.pad(x_cnhw, ((0, 0), (0, 0), (1, 1), (1, 1)))
    groups = []
    for dh in range(2):
        for dw in range(2):
            slabs = []
            for kh in range(3):
                for kw in range(3):
                    slabs.append(xp[:, :,
                                    dh + kh: dh + kh + 2 * Ho: 2,
                                    dw + kw: dw + kw + 2 * Wo: 2])
            g = jnp.stack(slabs, axis=0).reshape(9 * Cin, N * Ho * Wo)
            groups.append(g)
    return jnp.stack(groups, axis=0)


def init_conv_block_params(key, cin, cout):
    # Deterministic, PyTorch-default-like uniform init (synthetic weights).
    kw, kb = jax.random.split(key)
    fan_in = cin * 9
    bound = 1.0 / jnp.sqrt(jnp.float32(fan_in))
    weight = jax.random.uniform(kw, (cout, cin, 3, 3), jnp.float32, -bound, bound)
    conv_bias = jax.random.uniform(kb, (cout,), jnp.float32, -bound, bound)
    return dict(
        weight=weight, conv_bias=conv_bias,
        gamma=jnp.ones((cout,), jnp.float32), beta=jnp.zeros((cout,), jnp.float32),
        running_mean=jnp.zeros((cout,), jnp.float32),
        running_var=jnp.ones((cout,), jnp.float32),
    )


def conv_block_apply(params, x_cnhw, eps=1e-5):
    """Conv3x3(pad1) -> BN(eval) -> ReLU -> MaxPool2.  Input/output layout (C, N, H, W)."""
    Cin, N, H, W = x_cnhw.shape
    Ho, Wo = H // 2, W // 2
    w = params["weight"]                                   # (Cout, Cin, 3, 3)
    Cout = w.shape[0]

    scale = params["gamma"] / jnp.sqrt(params["running_var"] + eps)          # (Cout,)
    bias = (params["conv_bias"] - params["running_mean"]) * scale + params["beta"]
    # rows = (kh*3+kw)*Cin + cin, matching the im2col row order; BN scale folded in.
    w_mat = jnp.transpose(w, (2, 3, 1, 0)).reshape(9 * Cin, Cout)
    w_t = (w_mat * scale[None, :]).T.astype(jnp.bfloat16)                    # (Cout, K)
    bias_col = bias.reshape(Cout, 1).astype(jnp.float32)

    patches = _im2col_pooled_t(x_cnhw.astype(jnp.bfloat16))                  # (4, K, Mq) bf16
    Mq = N * Ho * Wo
    tm = _pick_tile(Mq, 9 * Cin, Cout)
    Mq_pad = _round_up(Mq, tm)
    if Mq_pad != Mq:                                                         # lane/tile padding
        patches = jnp.pad(patches, ((0, 0), (0, 0), (0, Mq_pad - Mq)))

    y = conv_bn_relu_pool(patches, w_t, bias_col, tm)                        # (Cout, Mq_pad) f32
    return y[:, :Mq].reshape(Cout, N, Ho, Wo)


class MetaTemplatePallas:
    """JAX/Pallas port of MetaTemplate with a Conv-4 style `feature` backbone."""

    def __init__(self, n_way, n_support, hidden=32, depth=4, in_channels=3,
                 flatten=True, change_way=True, seed=0):
        self.n_way = n_way
        self.n_support = n_support
        self.n_query = -1
        self.change_way = change_way
        self.flatten = flatten
        keys = jax.random.split(jax.random.PRNGKey(seed), depth)
        self.blocks = []
        cin = in_channels
        for d in range(depth):
            self.blocks.append(init_conv_block_params(keys[d], cin, hidden))
            cin = hidden

    def feature_forward(self, x_nchw):
        x = jnp.transpose(x_nchw, (1, 0, 2, 3))          # NCHW -> CNHW (channel rows)
        for p in self.blocks:
            x = conv_block_apply(p, x)
        feats = jnp.transpose(x, (1, 0, 2, 3))           # -> (N, C, h, w)
        if self.flatten:
            feats = feats.reshape(feats.shape[0], -1)    # PyTorch channel-major flatten
        return feats

    # MetaTemplate.forward: out = self.feature.forward(x)
    def forward(self, x):
        return self.feature_forward(x)

    # parse_feature (glue-only reshape/split around the same backbone)
    def parse_feature(self, x, is_feature):
        if is_feature:
            z_all = x
        else:
            x = x.reshape((self.n_way * (self.n_support + self.n_query),) + x.shape[2:])
            z_all = self.feature_forward(x)
            z_all = z_all.reshape(self.n_way, self.n_support + self.n_query, -1)
        return z_all[:, :self.n_support], z_all[:, self.n_support:]

    # TODO(synk): set_forward / set_forward_loss are abstract in the PyTorch module
    # (no concrete compute to translate); train/test loops are host-side training
    # orchestration, not kernel work.


if __name__ == "__main__":
    n_way, n_support, n_query = 2, 2, 2
    B = n_way * (n_support + n_query)          # 8 images
    C, H, W = 3, 16, 16
    x = jax.random.normal(jax.random.PRNGKey(0), (B, C, H, W), jnp.float32)

    model = MetaTemplatePallas(n_way=n_way, n_support=n_support,
                               hidden=32, depth=4, in_channels=C)
    fwd = jax.jit(model.forward)
    out = jax.block_until_ready(fwd(x))        # (8, 32): 16->8->4->2->1 spatial
    assert out.shape == (B, 32), out.shape
    assert bool(jnp.all(jnp.isfinite(out)))
    print("KERNEL_OK")
</pallas_src>

<mosaic_0001>
module attributes {stable_mosaic.version = 11 : i64} {
  func.func @_conv_bn_relu_pool_kernel(%arg0: i32, %arg1: memref<4x27x512xbf16, #tpu.memory_space<vmem>>, %arg2: memref<32x27xbf16, #tpu.memory_space<vmem>>, %arg3: memref<32x1xf32, #tpu.memory_space<vmem>>, %arg4: memref<32x512xf32, #tpu.memory_space<vmem>>) attributes {dimension_semantics = [#tpu.dimension_semantics<parallel>], iteration_bounds = array<i64: 1>, scalar_prefetch = 0 : i64, scratch_operands = 0 : i64, tpu.core_type = #tpu.core_type<tc>, window_params = [{transform_indices = @transform_0, window_bounds = array<i64: 4, 27, 512>}, {pipeline_mode = #tpu.pipeline_mode<synchronous>, transform_indices = @transform_1, window_bounds = array<i64: 32, 27>}, {pipeline_mode = #tpu.pipeline_mode<synchronous>, transform_indices = @transform_2, window_bounds = array<i64: 32, 1>}, {transform_indices = @transform_3, window_bounds = array<i64: 32, 512>}]} {
    %c0 = arith.constant 0 : index
    %c0_0 = arith.constant 0 : index
    %0 = vector.load %arg2[%c0, %c0_0] : memref<32x27xbf16, #tpu.memory_space<vmem>>, vector<32x27xbf16>
    %c0_1 = arith.constant 0 : index
    %c0_2 = arith.constant 0 : index
    %1 = vector.load %arg3[%c0_1, %c0_2] : memref<32x1xf32, #tpu.memory_space<vmem>>, vector<32x1xf32>
    %c0_3 = arith.constant 0 : index
    %c0_4 = arith.constant 0 : index
    %c0_5 = arith.constant 0 : index
    %2 = vector.load %arg1[%c0_3, %c0_4, %c0_5] : memref<4x27x512xbf16, #tpu.memory_space<vmem>>, vector<1x27x512xbf16>
    %3 = vector.shape_cast %2 : vector<1x27x512xbf16> to vector<27x512xbf16>
    %cst = arith.constant dense<0.000000e+00> : vector<32x512xf32>
    %4 = tpu.matmul %0, %3, %cst {dimension_numbers = #tpu.dot_dimension_numbers<[1], [0], [0], [1], [0, 0, 1, 1], [], []>} : vector<32x27xbf16>, vector<27x512xbf16>, vector<32x512xf32> -> vector<32x512xf32>
    %5 = vector.broadcast %1 : vector<32x1xf32> to vector<32x512xf32>
    %6 = arith.addf %4, %5 : vector<32x512xf32>
    %cst_6 = arith.constant 0.000000e+00 : f32
    %7 = vector.broadcast %cst_6 : f32 to vector<32x512xf32>
    %8 = arith.maximumf %6, %7 : vector<32x512xf32>
    %c1 = arith.constant 1 : index
    %c0_7 = arith.constant 0 : index
    %c0_8 = arith.constant 0 : index
    %9 = vector.load %arg1[%c1, %c0_7, %c0_8] : memref<4x27x512xbf16, #tpu.memory_space<vmem>>, vector<1x27x512xbf16>
    %10 = vector.shape_cast %9 : vector<1x27x512xbf16> to vector<27x512xbf16>
    %cst_9 = arith.constant dense<0.000000e+00> : vector<32x512xf32>
    %11 = tpu.matmul %0, %10, %cst_9 {dimension_numbers = #tpu.dot_dimension_numbers<[1], [0], [0], [1], [0, 0, 1, 1], [], []>} : vector<32x27xbf16>, vector<27x512xbf16>, vector<32x512xf32> -> vector<32x512xf32>
    %12 = vector.broadcast %1 : vector<32x1xf32> to vector<32x512xf32>
    %13 = arith.addf %11, %12 : vector<32x512xf32>
    %cst_10 = arith.constant 0.000000e+00 : f32
    %14 = vector.broadcast %cst_10 : f32 to vector<32x512xf32>
    %15 = arith.maximumf %13, %14 : vector<32x512xf32>
    %16 = arith.maximumf %8, %15 : vector<32x512xf32>
    %c2 = arith.constant 2 : index
    %c0_11 = arith.constant 0 : index
    %c0_12 = arith.constant 0 : index
    %17 = vector.load %arg1[%c2, %c0_11, %c0_12] : memref<4x27x512xbf16, #tpu.memory_space<vmem>>, vector<1x27x512xbf16>
    %18 = vector.shape_cast %17 : vector<1x27x512xbf16> to vector<27x512xbf16>
    %cst_13 = arith.constant dense<0.000000e+00> : vector<32x512xf32>
    %19 = tpu.matmul %0, %18, %cst_13 {dimension_numbers = #tpu.dot_dimension_numbers<[1], [0], [0], [1], [0, 0, 1, 1], [], []>} : vector<32x27xbf16>, vector<27x512xbf16>, vector<32x512xf32> -> vector<32x512xf32>
    %20 = vector.broadcast %1 : vector<32x1xf32> to vector<32x512xf32>
    %21 = arith.addf %19, %20 : vector<32x512xf32>
    %cst_14 = arith.constant 0.000000e+00 : f32
    %22 = vector.broadcast %cst_14 : f32 to vector<32x512xf32>
    %23 = arith.maximumf %21, %22 : vector<32x512xf32>
    %c3 = arith.constant 3 : index
    %c0_15 = arith.constant 0 : index
    %c0_16 = arith.constant 0 : index
    %24 = vector.load %arg1[%c3, %c0_15, %c0_16] : memref<4x27x512xbf16, #tpu.memory_space<vmem>>, vector<1x27x512xbf16>
    %25 = vector.shape_cast %24 : vector<1x27x512xbf16> to vector<27x512xbf16>
    %cst_17 = arith.constant dense<0.000000e+00> : vector<32x512xf32>
    %26 = tpu.matmul %0, %25, %cst_17 {dimension_numbers = #tpu.dot_dimension_numbers<[1], [0], [0], [1], [0, 0, 1, 1], [], []>} : vector<32x27xbf16>, vector<27x512xbf16>, vector<32x512xf32> -> vector<32x512xf32>
    %27 = vector.broadcast %1 : vector<32x1xf32> to vector<32x512xf32>
    %28 = arith.addf %26, %27 : vector<32x512xf32>
    %cst_18 = arith.constant 0.000000e+00 : f32
    %29 = vector.broadcast %cst_18 : f32 to vector<32x512xf32>
    %30 = arith.maximumf %28, %29 : vector<32x512xf32>
    %31 = arith.maximumf %23, %30 : vector<32x512xf32>
    %32 = arith.maximumf %16, %31 : vector<32x512xf32>
    %c0_19 = arith.constant 0 : index
    %c0_20 = arith.constant 0 : index
    %33 = vector.load %arg4[%c0_19, %c0_20] : memref<32x512xf32, #tpu.memory_space<vmem>>, vector<32x512xf32>
    tpu.vector_store %arg4[%c0_19, %c0_20], %32 {strides = array<i32>} : memref<32x512xf32, #tpu.memory_space<vmem>>, vector<32x512xf32>,
    return
  }
  func.func @transform_0(%arg0: i32) -> (i32, i32, i32) {
    %c0_i32 = arith.constant 0 : i32
    %c0_i32_0 = arith.constant 0 : i32
    %c0_i32_1 = arith.constant 0 : i32
    return %c0_i32, %c0_i32_0, %arg0 : i32, i32, i32
  }
  func.func @transform_1(%arg0: i32) -> (i32, i32) {
    %c0_i32 = arith.constant 0 : i32
    %c0_i32_0 = arith.constant 0 : i32
    %c0_i32_1 = arith.constant 0 : i32
    return %c0_i32, %c0_i32_0 : i32, i32
  }
  func.func @transform_2(%arg0: i32) -> (i32, i32) {
    %c0_i32 = arith.constant 0 : i32
    %c0_i32_0 = arith.constant 0 : i32
    %c0_i32_1 = arith.constant 0 : i32
    return %c0_i32, %c0_i32_0 : i32, i32
  }
  func.func @transform_3(%arg0: i32) -> (i32, i32) {
    %c0_i32 = arith.constant 0 : i32
    %c0_i32_0 = arith.constant 0 : i32
    return %c0_i32, %arg0 : i32, i32
  }
}

module attributes {stable_mosaic.version = 11 : i64} {
  func.func @_conv_bn_relu_pool_kernel(%arg0: i32, %arg1: memref<4x288x128xbf16, #tpu.memory_space<vmem>>, %arg2: memref<32x288xbf16, #tpu.memory_space<vmem>>, %arg3: memref<32x1xf32, #tpu.memory_space<vmem>>, %arg4: memref<32x128xf32, #tpu.memory_space<vmem>>) attributes {dimension_semantics = [#tpu.dimension_semantics<parallel>], iteration_bounds = array<i64: 1>, scalar_prefetch = 0 : i64, scratch_operands = 0 : i64, tpu.core_type = #tpu.core_type<tc>, window_params = [{transform_indices = @transform_0, window_bounds = array<i64: 4, 288, 128>}, {pipeline_mode = #tpu.pipeline_mode<synchronous>, transform_indices = @transform_1, window_bounds = array<i64: 32, 288>}, {pipeline_mode = #tpu.pipeline_mode<synchronous>, transform_indices = @transform_2, window_bounds = array<i64: 32, 1>}, {transform_indices = @transform_3, window_bounds = array<i64: 32, 128>}]} {
    %c0 = arith.constant 0 : index
    %c0_0 = arith.constant 0 : index
    %0 = vector.load %arg2[%c0, %c0_0] : memref<32x288xbf16, #tpu.memory_space<vmem>>, vector<32x288xbf16>
    %c0_1 = arith.constant 0 : index
    %c0_2 = arith.constant 0 : index
    %1 = vector.load %arg3[%c0_1, %c0_2] : memref<32x1xf32, #tpu.memory_space<vmem>>, vector<32x1xf32>
    %c0_3 = arith.constant 0 : index
    %c0_4 = arith.constant 0 : index
    %c0_5 = arith.constant 0 : index
    %2 = vector.load %arg1[%c0_3, %c0_4, %c0_5] : memref<4x288x128xbf16, #tpu.memory_space<vmem>>, vector<1x288x128xbf16>
    %3 = vector.shape_cast %2 : vector<1x288x128xbf16> to vector<288x128xbf16>
    %cst = arith.constant dense<0.000000e+00> : vector<32x128xf32>
    %4 = tpu.matmul %0, %3, %cst {dimension_numbers = #tpu.dot_dimension_numbers<[1], [0], [0], [1], [0, 0, 1, 1], [], []>} : vector<32x288xbf16>, vector<288x128xbf16>, vector<32x128xf32> -> vector<32x128xf32>
    %5 = vector.broadcast %1 : vector<32x1xf32> to vector<32x128xf32>
    %6 = arith.addf %4, %5 : vector<32x128xf32>
    %cst_6 = arith.constant 0.000000e+00 : f32
    %7 = vector.broadcast %cst_6 : f32 to vector<32x128xf32>
    %8 = arith.maximumf %6, %7 : vector<32x128xf32>
    %c1 = arith.constant 1 : index
    %c0_7 = arith.constant 0 : index
    %c0_8 = arith.constant 0 : index
    %9 = vector.load %arg1[%c1, %c0_7, %c0_8] : memref<4x288x128xbf16, #tpu.memory_space<vmem>>, vector<1x288x128xbf16>
    %10 = vector.shape_cast %9 : vector<1x288x128xbf16> to vector<288x128xbf16>
    %cst_9 = arith.constant dense<0.000000e+00> : vector<32x128xf32>
    %11 = tpu.matmul %0, %10, %cst_9 {dimension_numbers = #tpu.dot_dimension_numbers<[1], [0], [0], [1], [0, 0, 1, 1], [], []>} : vector<32x288xbf16>, vector<288x128xbf16>, vector<32x128xf32> -> vector<32x128xf32>
    %12 = vector.broadcast %1 : vector<32x1xf32> to vector<32x128xf32>
    %13 = arith.addf %11, %12 : vector<32x128xf32>
    %cst_10 = arith.constant 0.000000e+00 : f32
    %14 = vector.broadcast %cst_10 : f32 to vector<32x128xf32>
    %15 = arith.maximumf %13, %14 : vector<32x128xf32>
    %16 = arith.maximumf %8, %15 : vector<32x128xf32>
    %c2 = arith.constant 2 : index
    %c0_11 = arith.constant 0 : index
    %c0_12 = arith.constant 0 : index
    %17 = vector.load %arg1[%c2, %c0_11, %c0_12] : memref<4x288x128xbf16, #tpu.memory_space<vmem>>, vector<1x288x128xbf16>
    %18 = vector.shape_cast %17 : vector<1x288x128xbf16> to vector<288x128xbf16>
    %cst_13 = arith.constant dense<0.000000e+00> : vector<32x128xf32>
    %19 = tpu.matmul %0, %18, %cst_13 {dimension_numbers = #tpu.dot_dimension_numbers<[1], [0], [0], [1], [0, 0, 1, 1], [], []>} : vector<32x288xbf16>, vector<288x128xbf16>, vector<32x128xf32> -> vector<32x128xf32>
    %20 = vector.broadcast %1 : vector<32x1xf32> to vector<32x128xf32>
    %21 = arith.addf %19, %20 : vector<32x128xf32>
    %cst_14 = arith.constant 0.000000e+00 : f32
    %22 = vector.broadcast %cst_14 : f32 to vector<32x128xf32>
    %23 = arith.maximumf %21, %22 : vector<32x128xf32>
    %c3 = arith.constant 3 : index
    %c0_15 = arith.constant 0 : index
    %c0_16 = arith.constant 0 : index
    %24 = vector.load %arg1[%c3, %c0_15, %c0_16] : memref<4x288x128xbf16, #tpu.memory_space<vmem>>, vector<1x288x128xbf16>
    %25 = vector.shape_cast %24 : vector<1x288x128xbf16> to vector<288x128xbf16>
    %cst_17 = arith.constant dense<0.000000e+00> : vector<32x128xf32>
    %26 = tpu.matmul %0, %25, %cst_17 {dimension_numbers = #tpu.dot_dimension_numbers<[1], [0], [0], [1], [0, 0, 1, 1], [], []>} : vector<32x288xbf16>, vector<288x128xbf16>, vector<32x128xf32> -> vector<32x128xf32>
    %27 = vector.broadcast %1 : vector<32x1xf32> to vector<32x128xf32>
    %28 = arith.addf %26, %27 : vector<32x128xf32>
    %cst_18 = arith.constant 0.000000e+00 : f32
    %29 = vector.broadcast %cst_18 : f32 to vector<32x128xf32>
    %30 = arith.maximumf %28, %29 : vector<32x128xf32>
    %31 = arith.maximumf %23, %30 : vector<32x128xf32>
    %32 = arith.maximumf %16, %31 : vector<32x128xf32>
    %c0_19 = arith.constant 0 : index
    %c0_20 = arith.constant 0 : index
    %33 = vector.load %arg4[%c0_19, %c0_20] : memref<32x128xf32, #tpu.memory_space<vmem>>, vector<32x128xf32>
    tpu.vector_store %arg4[%c0_19, %c0_20], %32 {strides = array<i32>} : memref<32x128xf32, #tpu.memory_space<vmem>>, vector<32x128xf32>,
    return
  }
  func.func @transform_0(%arg0: i32) -> (i32, i32, i32) {
    %c0_i32 = arith.constant 0 : i32
    %c0_i32_0 = arith.constant 0 : i32
    %c0_i32_1 = arith.constant 0 : i32
    return %c0_i32, %c0_i32_0, %arg0 : i32, i32, i32
  }
  func.func @transform_1(%arg0: i32) -> (i32, i32) {
    %c0_i32 = arith.constant 0 : i32
    %c0_i32_0 = arith.constant 0 : i32
    %c0_i32_1 = arith.constant 0 : i32
    return %c0_i32, %c0_i32_0 : i32, i32
  }
  func.func @transform_2(%arg0: i32) -> (i32, i32) {
    %c0_i32 = arith.constant 0 : i32
    %c0_i32_0 = arith.constant 0 : i32
    %c0_i32_1 = arith.constant 0 : i32
    return %c0_i32, %c0_i32_0 : i32, i32
  }
  func.func @transform_3(%arg0: i32) -> (i32, i32) {
    %c0_i32 = arith.constant 0 : i32
    %c0_i32_0 = arith.constant 0 : i32
    return %c0_i32, %arg0 : i32, i32
  }
}

</mosaic_0001>

<bundles_post_ra>
// kernel: forward.4
= control target key start
LH: loop header
LB: loop body
LE: loop exit
PB: predicated region body
PF: predicated region fallthrough
CT: control target
= control target key end

     0   :  { %vm104_vm0 = vcmask 1044480   ;;  %vm105_vm1 = vcmask 1045504   ;;  %v957_v2 = vmov 65535   ;;  %v958_v12 = vmov 0   ;;  %s1479_s0 = inlined_call_operand.vmem [shape: bf16[4,27,512], index: 0, kind: input, shape index: {}]   ;;  %s1480_s1 = inlined_call_operand.vmem [shape: bf16[32,27], index: 1, kind: input, shape index: {}]   ;;  %s1481_s2 = inlined_call_operand.vmem [shape: f32[32,1], index: 2, kind: input, shape index: {}]   ;;  %s1482_s3 = inlined_call_operand.vmem [shape: f32[32,512], index: 3, kind: output, shape index: {}]  }
   0x1   :  { %v753_v0 = vld [vmem:[%s1479_s0 + $0x20] sm:$0xf]  ;;  %v927_v1 = vld [vmem:[%s1479_s0 + $0x2c] sm:$0x30]  ;;  %v106_v3 = vsel %vm104_vm0, 4294967295, %v957_v2  ;;  %955 = vset.pattern.permute.xlu0 %v958_v12  ;;  %956 = vset.pattern.permute.xlu1 %v958_v12  ;;  %vm97_vm2 = vcmask 220160  }
   0x2   :  { %v754_v4 = vor.u32 %v927_v1, %v753_v0  ;;  %v985_v5 = vsel %vm105_vm1, %v106_v3, 0  ;;  %v925_v6 = vld [vmem:[%s1479_s0 + $0x24] sm:$0xf]  ;;  %v755_v7 = vld [vmem:[%s1479_s0 + $0x30] sm:$0x30]  ;;  %v20_v61 = vld [vmem:[%s1481_s2 + $0x8] sm:$0xff] }
   0x3   :  { %v758_v8 = vor.u32 %v925_v6, %v755_v7  ;;  %v761_v9 = vld [vmem:[%s1479_s0 + $0x28] sm:$0xf]  ;;  %v928_v10 = vld [vmem:[%s1479_s0 + $0x34] sm:$0x30]  ;;  %v926_v11 = vld [vmem:[%s1479_s0 + $0x2c] sm:$0xf] }
   0x4   :  { %v109_v13 = vand.u32 %v754_v4, %v985_v5  ;;  %v762_v14 = vor.u32 %v928_v10, %v761_v9  ;;  %v763_v15 = vld [vmem:[%s1479_s0 + $0x38] sm:$0x30]  ;;  %v737_v16 = vld [vmem:[%s1479_s0] sm:$0xf]  ;;  %v923_v17 = vld [vmem:[%s1479_s0 + $0xc] sm:$0xf0] }
   0x5   :  { %v112_v18 = vand.u32 %v758_v8, %v985_v5  ;;  %v766_v19 = vor.u32 %v926_v11, %v763_v15  ;;  %v921_v20 = vld [vmem:[%s1479_s0 + $0x4] sm:$0xf]  ;;  %v739_v21 = vld [vmem:[%s1479_s0 + $0x10] sm:$0xf0]  ;;  %v745_v22 = vld [vmem:[%s1479_s0 + $0x8] sm:$0xf]  ;;  %v738_v24 = vor.u32 %v923_v17, %v737_v16 }
   0x6   :  { %126 = vmatpush.bf16.msra.mxu0 %v109_v13  ;;  %v115_v23 = vand.u32 %v762_v14, %v985_v5  ;;  %v924_v25 = vld [vmem:[%s1479_s0 + $0x14] sm:$0xf0]  ;;  %v922_v26 = vld [vmem:[%s1479_s0 + $0xc] sm:$0xf]  ;;  %v747_v27 = vld [vmem:[%s1479_s0 + $0x18] sm:$0xf0]  ;;  %v742_v29 = vor.u32 %v921_v20, %v739_v21 }
   0x7   :  { %145 = vmatpush.bf16.msra.mxu1 %v112_v18  ;;  %v118_v28 = vand.u32 %v766_v19, %v985_v5  ;;  %v1036_v30 = vld [vmem:[%s1480_s1] sm:$0xff]  ;;  %v809_v31 = vld [vmem:[%s1479_s0 + $0x68] sm:$0xf]  ;;  %v936_v32 = vld [vmem:[%s1479_s0 + $0x74] sm:$0x30]  ;;  %v746_v34 = vor.u32 %v924_v25, %v745_v22  ;;  %v750_v39 = vor.u32 %v922_v26, %v747_v27 }
   0x8   :  { %v934_v33 = vld [vmem:[%s1479_s0 + $0x6c] sm:$0xf]  ;;  %164 = vmatpush.bf16.msra.mxu2 %v115_v23  ;;  %v810_v35 = vor.u32 %v936_v32, %v809_v31  ;;  %v811_v36 = vld [vmem:[%s1479_s0 + $0x78] sm:$0x30]  ;;  %v801_v37 = vld [vmem:[%s1479_s0 + $0x60] sm:$0xf] }
   0x9   :  { %v935_v38 = vld [vmem:[%s1479_s0 + $0x6c] sm:$0x30]  ;;  %183 = vmatpush.bf16.msra.mxu3 %v118_v28  ;;  %v814_v40 = vor.u32 %v934_v33, %v811_v36  ;;  %v933_v42 = vld [vmem:[%s1479_s0 + $0x64] sm:$0xf]  ;;  %v803_v43 = vld [vmem:[%s1479_s0 + $0x70] sm:$0x30] }
   0xa   :  { %v802_v41 = vor.u32 %v935_v38, %v801_v37  ;;  %v19_v44 = vld [vmem:[%s1481_s2] sm:$0xff]  ;;  %127 = vmatpush.bf16.msra.mxu0 %v738_v24  ;;  %v264_v45 = vand.u32 %v810_v35, %v985_v5  ;;  %v806_v46 = vor.u32 %v933_v42, %v803_v43  ;;  %v793_v48 = vld [vmem:[%s1479_s0 + $0x48] sm:$0xf]  ;;  %v932_v49 = vld [vmem:[%s1479_s0 + $0x54] sm:$0xf0] }
   0xb   :  { %33 = vperm.xlu0 %955, %v19_v44   ;;  %146 = vmatpush.bf16.msra.mxu1 %v742_v29  ;;  %v267_v47 = vand.u32 %v814_v40, %v985_v5  ;;  %v930_v51 = vld [vmem:[%s1479_s0 + $0x4c] sm:$0xf]  ;;  %v795_v52 = vld [vmem:[%s1479_s0 + $0x58] sm:$0xf0]  ;;  %v785_v54 = vld [vmem:[%s1479_s0 + $0x40] sm:$0xf]  ;;  %v794_v56 = vor.u32 %v932_v49, %v793_v48 }
   0xc   :  { %165 = vmatpush.bf16.msra.mxu2 %v746_v34  ;;  %v258_v50 = vand.u32 %v802_v41, %v985_v5  ;;  %v261_v53 = vand.u32 %v806_v46, %v985_v5  ;;  %v931_v55 = vld [vmem:[%s1479_s0 + $0x4c] sm:$0xf0]  ;;  %v929_v57 = vld [vmem:[%s1479_s0 + $0x44] sm:$0xf]  ;;  %v787_v58 = vld [vmem:[%s1479_s0 + $0x50] sm:$0xf0]  ;;  %v798_v60 = vor.u32 %v930_v51, %v795_v52 }
   0xd   :  { %184 = vmatpush.bf16.msra.mxu3 %v750_v39  ;;  %767 = vmatmul.msk.bf16.vlgmr.msra.gmra.mxu0 %vm97_vm2, %v1036_v30  ;;  %v21_v59 = vld [vmem:[%s1481_s2 + $0x10] sm:$0xff]  ;;  %v786_v62 = vor.u32 %v931_v55, %v785_v54  ;;  %v857_v63 = vld [vmem:[%s1479_s0 + $0xa8] sm:$0xf]  ;;  %v944_v0 = vld [vmem:[%s1479_s0 + $0xb4] sm:$0x30]  ;;  %v790_v2 = vor.u32 %v929_v57, %v787_v58 }
   0xe   :  { %769 = vmatmul.msk.bf16.vlgmr.msra.gmra.mxu1 %vm97_vm2, %v1036_v30  ;;  %275 = vmatpush.bf16.msrb.mxu0 %v258_v50  ;;  %v942_v1 = vld [vmem:[%s1479_s0 + $0xac] sm:$0xf]  ;;  %v858_v3 = vor.u32 %v944_v0, %v857_v63  ;;  %v859_v4 = vld [vmem:[%s1479_s0 + $0xb8] sm:$0x30]  ;;  %v849_v6 = vld [vmem:[%s1479_s0 + $0xa0] sm:$0xf] }
   0xf   :  { %771 = vmatmul.msk.bf16.vlgmr.msra.gmra.mxu2 %vm97_vm2, %v1036_v30  ;;  %294 = vmatpush.bf16.msrb.mxu1 %v261_v53  ;;  %v862_v7 = vor.u32 %v942_v1, %v859_v4  ;;  %v943_v8 = vld [vmem:[%s1479_s0 + $0xac] sm:$0x30]  ;;  %v941_v9 = vld [vmem:[%s1479_s0 + $0xa4] sm:$0xf]  ;;  %v851_v10 = vld [vmem:[%s1479_s0 + $0xb0] sm:$0x30] }
  0x10   :  { %313 = vmatpush.bf16.msrb.mxu2 %v264_v45  ;;  %773 = vmatmul.msk.bf16.vlgmr.msra.gmra.mxu3 %vm97_vm2, %v1036_v30  ;;  %v429_v11 = vand.u32 %v858_v3, %v985_v5  ;;  %v850_v12 = vor.u32 %v943_v8, %v849_v6  ;;  %v854_v13 = vor.u32 %v941_v9, %v851_v10  ;;  %v22_v17 = vld [vmem:[%s1481_s2 + $0x18] sm:$0xff]  ;;  %v1141_v18 = vld [vmem:[%s1480_s1 + $0x8] sm:$0xff]  ;;  %v833_v24 = vld [vmem:[%s1479_s0 + $0x80] sm:$0xf] }
  0x11   :  { %332 = vmatpush.bf16.msrb.mxu3 %v267_v47  ;;  %43 = vperm.xlu1 %956, %v21_v59   ;;  %v432_v14 = vand.u32 %v862_v7, %v985_v5  ;;  %v841_v19 = vld [vmem:[%s1479_s0 + $0x88] sm:$0xf]  ;;  %v940_v20 = vld [vmem:[%s1479_s0 + $0x94] sm:$0xf0]  ;;  %v938_v21 = vld [vmem:[%s1479_s0 + $0x8c] sm:$0xf] }
  0x12   :  { %276 = vmatpush.bf16.msrb.mxu0 %v786_v62  ;;  %v423_v15 = vand.u32 %v850_v12, %v985_v5  ;;  %v426_v16 = vand.u32 %v854_v13, %v985_v5  ;;  %v842_v22 = vor.u32 %v940_v20, %v841_v19  ;;  %v843_v23 = vld [vmem:[%s1479_s0 + $0x98] sm:$0xf0]  ;;  %v939_v25 = vld [vmem:[%s1479_s0 + $0x8c] sm:$0xf0]  ;;  %v937_v28 = vld [vmem:[%s1479_s0 + $0x84] sm:$0xf] }
  0x13   :  { %38 = vperm.xlu0 %955, %v20_v61   ;;  %295 = vmatpush.bf16.msrb.mxu1 %v790_v2  ;;  %v846_v26 = vor.u32 %v938_v21, %v843_v23  ;;  %v834_v27 = vor.u32 %v939_v25, %v833_v24  ;;  %v835_v29 = vld [vmem:[%s1479_s0 + $0x90] sm:$0xf0]  ;;  %v905_v32 = vld [vmem:[%s1479_s0 + $0xe8] sm:$0xf]  ;;  %v952_v33 = vld [vmem:[%s1479_s0 + $0xf4] sm:$0x30] }
  0x14   :  { %314 = vmatpush.bf16.msrb.mxu2 %v794_v56  ;;  %v838_v31 = vor.u32 %v937_v28, %v835_v29  ;;  %v950_v34 = vld [vmem:[%s1479_s0 + $0xec] sm:$0xf]  ;;  %v906_v35 = vor.u32 %v952_v33, %v905_v32  ;;  %v907_v36 = vld [vmem:[%s1479_s0 + $0xf8] sm:$0x30]  ;;  %v897_v37 = vld [vmem:[%s1479_s0 + $0xe0] sm:$0xf] }
  0x15   :  { %333 = vmatpush.bf16.msrb.mxu3 %v798_v60  ;;  %v951_v38 = vld [vmem:[%s1479_s0 + $0xec] sm:$0x30]  ;;  %v910_v39 = vor.u32 %v950_v34, %v907_v36  ;;  %v949_v41 = vld [vmem:[%s1479_s0 + $0xe4] sm:$0xf]  ;;  %v899_v42 = vld [vmem:[%s1479_s0 + $0xf0] sm:$0x30] }
  0x16   :  { %440 = vmatpush.bf16.msra.mxu0 %v423_v15  ;;  %v898_v40 = vor.u32 %v951_v38, %v897_v37  ;;  %v578_v43 = vand.u32 %v906_v35, %v985_v5  ;;  %v902_v44 = vor.u32 %v949_v41, %v899_v42  ;;  %v889_v48 = vld [vmem:[%s1479_s0 + $0xc8] sm:$0xf]  ;;  %v946_v49 = vld [vmem:[%s1479_s0 + $0xcc] sm:$0xf]  ;;  %v891_v51 = vld [vmem:[%s1479_s0 + $0xd8] sm:$0xf0] }
  0x17   :  { %459 = vmatpush.bf16.msra.mxu1 %v426_v16  ;;  %v581_v45 = vand.u32 %v910_v39, %v985_v5  ;;  %v881_v52 = vld [vmem:[%s1479_s0 + $0xc0] sm:$0xf]  ;;  %v947_v53 = vld [vmem:[%s1479_s0 + $0xcc] sm:$0xf0]  ;;  %v894_v54 = vor.u32 %v946_v49, %v891_v51  ;;  %v945_v56 = vld [vmem:[%s1479_s0 + $0xc4] sm:$0xf] }
  0x18   :  { %478 = vmatpush.bf16.msra.mxu2 %v429_v11  ;;  %v572_v46 = vand.u32 %v898_v40, %v985_v5  ;;  %v575_v47 = vand.u32 %v902_v44, %v985_v5  ;;  %v948_v5 = vld [vmem:[%s1479_s0 + $0xd4] sm:$0xf0]  ;;  %v882_v55 = vor.u32 %v947_v53, %v881_v52  ;;  %v883_v57 = vld [vmem:[%s1479_s0 + $0xd0] sm:$0xf0] }
  0x19   :  { %497 = vmatpush.bf16.msra.mxu3 %v432_v14  ;;  %48 = vperm.xlu1 %956, %v22_v17   ;;  %v890_v50 = vor.u32 %v948_v5, %v889_v48  ;;  %v886_v58 = vor.u32 %v945_v56, %v883_v57 }
  0x1a   :  { %441 = vmatpush.bf16.msra.mxu0 %v834_v27 }
  0x1b   :  { %460 = vmatpush.bf16.msra.mxu1 %v838_v31 }
  0x1c   :  { %479 = vmatpush.bf16.msra.mxu2 %v842_v22 }
  0x1d   :  { %768 = vmatmul.msk.bf16.gmra.mxu0 %vm97_vm2, %v1141_v18  ;;  %498 = vmatpush.bf16.msra.mxu3 %v846_v26 }
  0x1e   :  { %770 = vmatmul.msk.bf16.gmra.mxu1 %vm97_vm2, %v1141_v18 }
  0x1f   :  { %772 = vmatmul.msk.bf16.gmra.mxu2 %vm97_vm2, %v1141_v18 }
  0x20   :  { %774 = vmatmul.msk.bf16.gmra.mxu3 %vm97_vm2, %v1141_v18 }
  0x2d   :  { %815 = vmatmul.msk.bf16.vlgmr.msrb.gmra.mxu0 %vm97_vm2, %v1036_v30 }
  0x2e   :  { %817 = vmatmul.msk.bf16.vlgmr.msrb.gmra.mxu1 %vm97_vm2, %v1036_v30  ;;  %589 = vmatpush.bf16.msrb.mxu0 %v572_v46 }
  0x2f   :  { %819 = vmatmul.msk.bf16.vlgmr.msrb.gmra.mxu2 %vm97_vm2, %v1036_v30  ;;  %608 = vmatpush.bf16.msrb.mxu1 %v575_v47 }
  0x30   :  { %821 = vmatmul.msk.bf16.vlgmr.msrb.gmra.mxu3 %vm97_vm2, %v1036_v30  ;;  %627 = vmatpush.bf16.msrb.mxu2 %v578_v43 }
  0x31   :  { %646 = vmatpush.bf16.msrb.mxu3 %v581_v45 }
  0x32   :  { %590 = vmatpush.bf16.msrb.mxu0 %v882_v55 }
  0x33   :  { %609 = vmatpush.bf16.msrb.mxu1 %v886_v58 }
  0x34   :  { %628 = vmatpush.bf16.msrb.mxu2 %v890_v50 }
  0x35   :  { %647 = vmatpush.bf16.msrb.mxu3 %v894_v54 }
  0x3d   :  { %816 = vmatmul.msk.bf16.gmra.mxu0 %vm97_vm2, %v1141_v18 }
  0x3e   :  { %818 = vmatmul.msk.bf16.gmra.mxu1 %vm97_vm2, %v1141_v18 }
  0x3f   :  { %820 = vmatmul.msk.bf16.gmra.mxu2 %vm97_vm2, %v1141_v18 }
  0x40   :  { %822 = vmatmul.msk.bf16.gmra.mxu3 %vm97_vm2, %v1141_v18 }
  0x4d   :  { %863 = vmatmul.msk.bf16.vlgmr.msra.gmra.mxu0 %vm97_vm2, %v1036_v30 }
  0x4e   :  { %865 = vmatmul.msk.bf16.vlgmr.msra.gmra.mxu1 %vm97_vm2, %v1036_v30 }
  0x4f   :  { %867 = vmatmul.msk.bf16.vlgmr.msra.gmra.mxu2 %vm97_vm2, %v1036_v30 }
  0x50   :  { %869 = vmatmul.msk.bf16.vlgmr.msra.gmra.mxu3 %vm97_vm2, %v1036_v30 }
  0x5d   :  { %864 = vmatmul.msk.bf16.gmra.mxu0 %vm97_vm2, %v1141_v18 }
  0x5e   :  { %866 = vmatmul.msk.bf16.gmra.mxu1 %vm97_vm2, %v1141_v18 }
  0x5f   :  { %868 = vmatmul.msk.bf16.gmra.mxu2 %vm97_vm2, %v1141_v18 }
  0x60   :  { %870 = vmatmul.msk.bf16.gmra.mxu3 %vm97_vm2, %v1141_v18 }
  0x6d   :  { %911 = vmatmul.msk.bf16.vlgmr.msrb.gmra.mxu0 %vm97_vm2, %v1036_v30 }
  0x6e   :  { %913 = vmatmul.msk.bf16.vlgmr.msrb.gmra.mxu1 %vm97_vm2, %v1036_v30 }
  0x6f   :  { %915 = vmatmul.msk.bf16.vlgmr.msrb.gmra.mxu2 %vm97_vm2, %v1036_v30 }
  0x70   :  { %917 = vmatmul.msk.bf16.vlgmr.msrb.gmra.mxu3 %vm97_vm2, %v1036_v30 }
  0x7d   :  { %912 = vmatmul.msk.bf16.gmra.mxu0 %vm97_vm2, %v1141_v18  ;;  %v1283_v9 = vpop.permute.xlu0 %33 }
  0x7e   :  { %914 = vmatmul.msk.bf16.gmra.mxu1 %vm97_vm2, %v1141_v18 }
  0x7f   :  { %916 = vmatmul.msk.bf16.gmra.mxu2 %vm97_vm2, %v1141_v18 }
  0x80   :  { %918 = vmatmul.msk.bf16.gmra.mxu3 %vm97_vm2, %v1141_v18 }
  0x83   :  { %v1305_v36 = vpop.permute.xlu1 %43 }
  0x85   :  { %v1293_v21 = vpop.permute.xlu0 %38 }
  0x8a   :  { %v129_v59 = vpop.f32.mrf.mxu0 }
  0x8b   :  { %v148_v60 = vpop.f32.mrf.mxu1  ;;  %v130_v10 = vadd.f32 %v129_v59, %v1283_v9 }
  0x8c   :  { %v149_v11 = vadd.f32 %v148_v60, %v1283_v9 }
  0x8d   :  { %v196_v18 = vmax.f32 %v130_v10, 0.0  ;;  %v1325_v10 = vpop.permute.xlu1 %48 }
  0x8e   :  { %v197_v20 = vmax.f32 %v149_v11, 0.0 }
  0x92   :  { %v167_v61 = vpop.f32.mrf.mxu2  ;;  %v131_v62 = vpop.f32.mrf.mxu0 }
  0x93   :  { %v186_v63 = vpop.f32.mrf.mxu3  ;;  %v150_v0 = vpop.f32.mrf.mxu1  ;;  %v168_v25 = vadd.f32 %v167_v61, %v1283_v9  ;;  %v132_v26 = vadd.f32 %v131_v62, %v1293_v21 }
  0x94   :  { %v187_v27 = vadd.f32 %v186_v63, %v1283_v9  ;;  %v151_v28 = vadd.f32 %v150_v0, %v1293_v21 }
  0x95   :  { %v198_v39 = vmax.f32 %v168_v25, 0.0  ;;  %v200_v40 = vmax.f32 %v132_v26, 0.0 }
  0x96   :  { %v199_v43 = vmax.f32 %v187_v27, 0.0  ;;  %v201_v44 = vmax.f32 %v151_v28, 0.0 }
  0x9a   :  { %v169_v1 = vpop.f32.mrf.mxu2  ;;  %v134_v30 = vpop.f32.mrf.mxu0 }
  0x9b   :  { %v188_v2 = vpop.f32.mrf.mxu3  ;;  %v153_v3 = vpop.f32.mrf.mxu1  ;;  %v170_v50 = vadd.f32 %v169_v1, %v1293_v21  ;;  %v135_v51 = vadd.f32 %v134_v30, %v1305_v36 }
  0x9c   :  { %v189_v52 = vadd.f32 %v188_v2, %v1293_v21  ;;  %v154_v53 = vadd.f32 %v153_v3, %v1305_v36 }
  0x9d   :  { %v202_v62 = vmax.f32 %v170_v50, 0.0  ;;  %v204_v63 = vmax.f32 %v135_v51, 0.0 }
  0x9e   :  { %v203_v30 = vmax.f32 %v189_v52, 0.0  ;;  %v205_v2 = vmax.f32 %v154_v53, 0.0 }
  0xa2   :  { %v1275_v4 = vpop.f32.mrf.mxu2  ;;  %v1277_v6 = vpop.f32.mrf.mxu0 }
  0xa3   :  { %v1279_v7 = vpop.f32.mrf.mxu3  ;;  %v1281_v8 = vpop.f32.mrf.mxu1 }
  0xaa   :  { %v1287_v12 = vpop.f32.mrf.mxu2  ;;  %v278_v13 = vpop.f32.mrf.mxu0 }
  0xab   :  { %v1289_v14 = vpop.f32.mrf.mxu3  ;;  %v279_v15 = vadd.f32 %v278_v13, %v1283_v9  ;;  %v297_v16 = vpop.f32.mrf.mxu1 }
  0xac   :  { %v298_v17 = vadd.f32 %v297_v16, %v1283_v9 }
  0xad   :  { %v345_v19 = vmax.f32 %v279_v15, 0.0 }
  0xae   :  { %v346_v22 = vmax.f32 %v298_v17, 0.0 }
  0xaf   :  { %v1295_v23 = vmax.f32 %v196_v18, %v345_v19  ;;  %v173_v18 = vadd.f32 %v1275_v4, %v1305_v36  ;;  %v137_v19 = vadd.f32 %v1277_v6, %v1325_v10 }
  0xb0   :  { %v1297_v24 = vmax.f32 %v197_v20, %v346_v22  ;;  %v192_v20 = vadd.f32 %v1279_v7, %v1305_v36  ;;  %v156_v22 = vadd.f32 %v1281_v8, %v1325_v10 }
  0xb1   :  { %v208_v6 = vmax.f32 %v137_v19, 0.0 }
  0xb2   :  { %v316_v29 = vpop.f32.mrf.mxu2  ;;  %v280_v31 = vpop.f32.mrf.mxu0  ;;  %v207_v7 = vmax.f32 %v192_v20, 0.0 }
  0xb3   :  { %v317_v32 = vadd.f32 %v316_v29, %v1283_v9  ;;  %v335_v33 = vpop.f32.mrf.mxu3  ;;  %v281_v34 = vadd.f32 %v280_v31, %v1293_v21  ;;  %v299_v35 = vpop.f32.mrf.mxu1 }
  0xb4   :  { %v336_v37 = vadd.f32 %v335_v33, %v1283_v9  ;;  %v300_v38 = vadd.f32 %v299_v35, %v1293_v21  ;;  %v206_v33 = vmax.f32 %v173_v18, 0.0 }
  0xb5   :  { %v347_v41 = vmax.f32 %v317_v32, 0.0  ;;  %v349_v42 = vmax.f32 %v281_v34, 0.0 }
  0xb6   :  { %v348_v45 = vmax.f32 %v336_v37, 0.0  ;;  %v350_v46 = vmax.f32 %v300_v38, 0.0  ;;  %v209_v37 = vmax.f32 %v156_v22, 0.0 }
  0xb7   :  { %v1309_v47 = vmax.f32 %v198_v39, %v347_v41  ;;  %v1311_v48 = vmax.f32 %v200_v40, %v349_v42 }
  0xb8   :  { %v1313_v5 = vmax.f32 %v199_v43, %v348_v45  ;;  %v1315_v49 = vmax.f32 %v201_v44, %v350_v46  ;;  %v175_v43 = vadd.f32 %v1287_v12, %v1325_v10  ;;  %v194_v44 = vadd.f32 %v1289_v14, %v1325_v10 }
  0xba   :  { %v318_v54 = vpop.f32.mrf.mxu2  ;;  %v283_v55 = vpop.f32.mrf.mxu0 }
  0xbb   :  { %v319_v56 = vadd.f32 %v318_v54, %v1293_v21  ;;  %v337_v57 = vpop.f32.mrf.mxu3  ;;  %v284_v58 = vadd.f32 %v283_v55, %v1305_v36  ;;  %v302_v59 = vpop.f32.mrf.mxu1  ;;  %v210_v54 = vmax.f32 %v175_v43, 0.0 }
  0xbc   :  { %v338_v60 = vadd.f32 %v337_v57, %v1293_v21  ;;  %v303_v61 = vadd.f32 %v302_v59, %v1305_v36 }
  0xbd   :  { %v351_v0 = vmax.f32 %v319_v56, 0.0  ;;  %v353_v1 = vmax.f32 %v284_v58, 0.0  ;;  %v211_v56 = vmax.f32 %v194_v44, 0.0 }
  0xbe   :  { %v352_v3 = vmax.f32 %v338_v60, 0.0  ;;  %v354_v11 = vmax.f32 %v303_v61, 0.0 }
  0xbf   :  { %v1327_v13 = vmax.f32 %v202_v62, %v351_v0  ;;  %v1329_v15 = vmax.f32 %v204_v63, %v353_v1 }
  0xc0   :  { %v1331_v16 = vmax.f32 %v203_v30, %v352_v3  ;;  %v1333_v17 = vmax.f32 %v205_v2, %v354_v11 }
  0xc2   :  { %v321_v25 = vpop.f32.mrf.mxu2  ;;  %v285_v26 = vpop.f32.mrf.mxu0 }
  0xc3   :  { %v322_v27 = vadd.f32 %v321_v25, %v1305_v36  ;;  %v340_v28 = vpop.f32.mrf.mxu3  ;;  %v286_v29 = vadd.f32 %v285_v26, %v1325_v10  ;;  %v304_v31 = vpop.f32.mrf.mxu1 }
  0xc4   :  { %v341_v32 = vadd.f32 %v340_v28, %v1305_v36  ;;  %v305_v4 = vadd.f32 %v304_v31, %v1325_v10 }
  0xc5   :  { %v355_v34 = vmax.f32 %v322_v27, 0.0  ;;  %v357_v35 = vmax.f32 %v286_v29, 0.0 }
  0xc6   :  { %v356_v38 = vmax.f32 %v341_v32, 0.0  ;;  %v358_v8 = vmax.f32 %v305_v4, 0.0 }
  0xc7   :  { %v1347_v39 = vmax.f32 %v206_v33, %v355_v34  ;;  %v1349_v40 = vmax.f32 %v208_v6, %v357_v35 }
  0xc8   :  { %v1351_v41 = vmax.f32 %v207_v7, %v356_v38  ;;  %v1353_v42 = vmax.f32 %v209_v37, %v358_v8 }
  0xca   :  { %v323_v45 = vpop.f32.mrf.mxu2  ;;  %v443_v46 = vpop.f32.mrf.mxu0 }
  0xcb   :  { %v324_v50 = vadd.f32 %v323_v45, %v1325_v10  ;;  %v342_v51 = vpop.f32.mrf.mxu3  ;;  %v462_v52 = vpop.f32.mrf.mxu1  ;;  %v444_v18 = vadd.f32 %v443_v46, %v1283_v9 }
  0xcc   :  { %v343_v53 = vadd.f32 %v342_v51, %v1325_v10  ;;  %v463_v19 = vadd.f32 %v462_v52, %v1283_v9 }
  0xcd   :  { %v359_v55 = vmax.f32 %v324_v50, 0.0  ;;  %v510_v29 = vmax.f32 %v444_v18, 0.0 }
  0xce   :  { %v360_v57 = vmax.f32 %v343_v53, 0.0  ;;  %v511_v32 = vmax.f32 %v463_v19, 0.0 }
  0xcf   :  { %v1361_v58 = vmax.f32 %v210_v54, %v359_v55 }
  0xd0   :  { %v1363_v59 = vmax.f32 %v211_v56, %v360_v57 }
  0xd2   :  { %v481_v12 = vpop.f32.mrf.mxu2  ;;  %v445_v60 = vpop.f32.mrf.mxu0 }
  0xd3   :  { %v500_v61 = vpop.f32.mrf.mxu3  ;;  %v464_v14 = vpop.f32.mrf.mxu1  ;;  %v482_v34 = vadd.f32 %v481_v12, %v1283_v9  ;;  %v446_v35 = vadd.f32 %v445_v60, %v1293_v21 }
  0xd4   :  { %v501_v37 = vadd.f32 %v500_v61, %v1283_v9  ;;  %v465_v38 = vadd.f32 %v464_v14, %v1293_v21 }
  0xd5   :  { %v512_v52 = vmax.f32 %v482_v34, 0.0  ;;  %v514_v53 = vmax.f32 %v446_v35, 0.0 }
  0xd6   :  { %v513_v56 = vmax.f32 %v501_v37, 0.0  ;;  %v515_v57 = vmax.f32 %v465_v38, 0.0 }
  0xda   :  { %v483_v62 = vpop.f32.mrf.mxu2  ;;  %v448_v63 = vpop.f32.mrf.mxu0 }
  0xdb   :  { %v502_v0 = vpop.f32.mrf.mxu3  ;;  %v467_v1 = vpop.f32.mrf.mxu1 }
  0xe2   :  { %v1365_v30 = vpop.f32.mrf.mxu2  ;;  %v1367_v2 = vpop.f32.mrf.mxu0 }
  0xe3   :  { %v1369_v3 = vpop.f32.mrf.mxu3  ;;  %v1371_v11 = vpop.f32.mrf.mxu1 }
  0xea   :  { %v1375_v20 = vpop.f32.mrf.mxu2  ;;  %v592_v22 = vpop.f32.mrf.mxu0 }
  0xeb   :  { %v1377_v25 = vpop.f32.mrf.mxu3  ;;  %v593_v26 = vadd.f32 %v592_v22, %v1283_v9  ;;  %v611_v27 = vpop.f32.mrf.mxu1  ;;  %v484_v22 = vadd.f32 %v483_v62, %v1293_v21 }
  0xec   :  { %v612_v28 = vadd.f32 %v611_v27, %v1283_v9 }
  0xed   :  { %v659_v31 = vmax.f32 %v593_v26, 0.0  ;;  %v449_v26 = vadd.f32 %v448_v63, %v1305_v36 }
  0xee   :  { %v660_v4 = vmax.f32 %v612_v28, 0.0  ;;  %v503_v28 = vadd.f32 %v502_v0, %v1293_v21  ;;  %v516_v0 = vmax.f32 %v484_v22, 0.0 }
  0xef   :  { %v675_v33 = vmax.f32 %v510_v29, %v659_v31  ;;  %v468_v29 = vadd.f32 %v467_v1, %v1305_v36  ;;  %v518_v1 = vmax.f32 %v449_v26, 0.0  ;;  %v489_v26 = vadd.f32 %v1375_v20, %v1325_v10 }
  0xf0   :  { %v676_v6 = vmax.f32 %v511_v32, %v660_v4  ;;  %v517_v35 = vmax.f32 %v503_v28, 0.0  ;;  %v508_v28 = vadd.f32 %v1377_v25, %v1325_v10 }
  0xf1   :  { %v691_v7 = vmax.f32 %v1295_v23, %v675_v33 }
  0xf2   :  { %v692_v8 = vmax.f32 %v1297_v24, %v676_v6  ;;  %v630_v43 = vpop.f32.mrf.mxu2  ;;  %v594_v44 = vpop.f32.mrf.mxu0 }
  0xf3   :  { %707 = vst [vmem:[%s1482_s3] sm:$0xff] %v691_v7  ;;  %v631_v45 = vadd.f32 %v630_v43, %v1283_v9  ;;  %v649_v46 = vpop.f32.mrf.mxu3  ;;  %v595_v50 = vadd.f32 %v594_v44, %v1293_v21  ;;  %v613_v51 = vpop.f32.mrf.mxu1  ;;  %v519_v7 = vmax.f32 %v468_v29, 0.0 }
  0xf4   :  { %708 = vst [vmem:[%s1482_s3 + $0x8] sm:$0xff] %v692_v8  ;;  %v650_v23 = vadd.f32 %v649_v46, %v1283_v9  ;;  %v614_v24 = vadd.f32 %v613_v51, %v1293_v21  ;;  %v451_v46 = vadd.f32 %v1367_v2, %v1325_v10 }
  0xf5   :  { %v661_v54 = vmax.f32 %v631_v45, 0.0  ;;  %v663_v55 = vmax.f32 %v595_v50, 0.0  ;;  %v487_v45 = vadd.f32 %v1365_v30, %v1305_v36 }
  0xf6   :  { %v662_v12 = vmax.f32 %v650_v23, 0.0  ;;  %v664_v60 = vmax.f32 %v614_v24, 0.0  ;;  %v506_v23 = vadd.f32 %v1369_v3, %v1305_v36  ;;  %v470_v24 = vadd.f32 %v1371_v11, %v1325_v10 }
  0xf7   :  { %v677_v61 = vmax.f32 %v512_v52, %v661_v54  ;;  %v679_v14 = vmax.f32 %v514_v53, %v663_v55  ;;  %v520_v3 = vmax.f32 %v487_v45, 0.0  ;;  %v522_v11 = vmax.f32 %v451_v46, 0.0 }
  0xf8   :  { %v678_v18 = vmax.f32 %v513_v56, %v662_v12  ;;  %v680_v19 = vmax.f32 %v515_v57, %v664_v60  ;;  %v521_v12 = vmax.f32 %v506_v23, 0.0  ;;  %v523_v60 = vmax.f32 %v470_v24, 0.0 }
  0xf9   :  { %v693_v9 = vmax.f32 %v1309_v47, %v677_v61  ;;  %v695_v27 = vmax.f32 %v1311_v48, %v679_v14 }
  0xfa   :  { %v694_v31 = vmax.f32 %v1313_v5, %v678_v18  ;;  %v696_v32 = vmax.f32 %v1315_v49, %v680_v19  ;;  %v632_v4 = vpop.f32.mrf.mxu2  ;;  %v597_v33 = vpop.f32.mrf.mxu0 }
  0xfb   :  { %709 = vst [vmem:[%s1482_s3 + $0x10] sm:$0xff] %v693_v9  ;;  %v633_v62 = vadd.f32 %v632_v4, %v1293_v21  ;;  %v651_v63 = vpop.f32.mrf.mxu3  ;;  %v598_v47 = vadd.f32 %v597_v33, %v1305_v36  ;;  %v616_v48 = vpop.f32.mrf.mxu1 }
  0xfc   :  { %710 = vst [vmem:[%s1482_s3 + $0x18] sm:$0xff] %v694_v31  ;;  %v652_v5 = vadd.f32 %v651_v63, %v1293_v21  ;;  %v617_v49 = vadd.f32 %v616_v48, %v1305_v36 }
  0xfd   :  { %711 = vst [vmem:[%s1482_s3 + $0x20] sm:$0xff] %v695_v27  ;;  %v665_v6 = vmax.f32 %v633_v62, 0.0  ;;  %v667_v34 = vmax.f32 %v598_v47, 0.0 }
  0xfe   :  { %712 = vst [vmem:[%s1482_s3 + $0x28] sm:$0xff] %v696_v32  ;;  %v666_v37 = vmax.f32 %v652_v5, 0.0  ;;  %v668_v38 = vmax.f32 %v617_v49, 0.0 }
  0xff   :  { %v681_v8 = vmax.f32 %v516_v0, %v665_v6  ;;  %v683_v21 = vmax.f32 %v518_v1, %v667_v34 }
 0x100   :  { %v682_v43 = vmax.f32 %v517_v35, %v666_v37  ;;  %v684_v44 = vmax.f32 %v519_v7, %v668_v38 }
 0x101   :  { %v697_v50 = vmax.f32 %v1327_v13, %v681_v8  ;;  %v699_v51 = vmax.f32 %v1329_v15, %v683_v21 }
 0x102   :  { %v698_v52 = vmax.f32 %v1331_v16, %v682_v43  ;;  %v700_v53 = vmax.f32 %v1333_v17, %v684_v44  ;;  %v635_v54 = vpop.f32.mrf.mxu2  ;;  %v599_v55 = vpop.f32.mrf.mxu0 }
 0x103   :  { %713 = vst [vmem:[%s1482_s3 + $0x30] sm:$0xff] %v697_v50  ;;  %v636_v13 = vadd.f32 %v635_v54, %v1305_v36  ;;  %v654_v30 = vpop.f32.mrf.mxu3  ;;  %v600_v15 = vadd.f32 %v599_v55, %v1325_v10  ;;  %v618_v2 = vpop.f32.mrf.mxu1 }
 0x104   :  { %714 = vst [vmem:[%s1482_s3 + $0x38] sm:$0xff] %v698_v52  ;;  %v655_v16 = vadd.f32 %v654_v30, %v1305_v36  ;;  %v619_v17 = vadd.f32 %v618_v2, %v1325_v10 }
 0x105   :  { %715 = vst [vmem:[%s1482_s3 + $0x40] sm:$0xff] %v699_v51  ;;  %v669_v56 = vmax.f32 %v636_v13, 0.0  ;;  %v671_v57 = vmax.f32 %v600_v15, 0.0 }
 0x106   :  { %716 = vst [vmem:[%s1482_s3 + $0x48] sm:$0xff] %v700_v53  ;;  %v670_v61 = vmax.f32 %v655_v16, 0.0  ;;  %v672_v14 = vmax.f32 %v619_v17, 0.0 }
 0x107   :  { %v685_v18 = vmax.f32 %v520_v3, %v669_v56  ;;  %v687_v36 = vmax.f32 %v522_v11, %v671_v57 }
 0x108   :  { %v686_v19 = vmax.f32 %v521_v12, %v670_v61  ;;  %v688_v22 = vmax.f32 %v523_v60, %v672_v14 }
 0x109   :  { %v701_v9 = vmax.f32 %v1347_v39, %v685_v18  ;;  %v703_v27 = vmax.f32 %v1349_v40, %v687_v36  ;;  %v524_v40 = vmax.f32 %v489_v26, 0.0 }
 0x10a   :  { %v702_v29 = vmax.f32 %v1351_v41, %v686_v19  ;;  %v704_v31 = vmax.f32 %v1353_v42, %v688_v22  ;;  %v637_v32 = vpop.f32.mrf.mxu2  ;;  %v525_v42 = vmax.f32 %v508_v28, 0.0 }
 0x10b   :  { %717 = vst [vmem:[%s1482_s3 + $0x50] sm:$0xff] %v701_v9  ;;  %v638_v4 = vadd.f32 %v637_v32, %v1325_v10  ;;  %v656_v33 = vpop.f32.mrf.mxu3 }
 0x10c   :  { %718 = vst [vmem:[%s1482_s3 + $0x58] sm:$0xff] %v702_v29  ;;  %v657_v39 = vadd.f32 %v656_v33, %v1325_v10 }
 0x10d   :  { %719 = vst [vmem:[%s1482_s3 + $0x60] sm:$0xff] %v703_v27  ;;  %v673_v41 = vmax.f32 %v638_v4, 0.0 }
 0x10e   :  { %720 = vst [vmem:[%s1482_s3 + $0x68] sm:$0xff] %v704_v31  ;;  %v674_v20 = vmax.f32 %v657_v39, 0.0 }
 0x10f   :  { %v689_v25 = vmax.f32 %v524_v40, %v673_v41 }
 0x110   :  { %v690_v62 = vmax.f32 %v525_v42, %v674_v20 }
 0x111   :  { %v705_v63 = vmax.f32 %v1361_v58, %v689_v25 }
 0x112   :  { %v706_v47 = vmax.f32 %v1363_v59, %v690_v62 }
 0x113   :  { %721 = vst [vmem:[%s1482_s3 + $0x70] sm:$0xff] %v705_v63 }
 0x114   :  { %722 = vst [vmem:[%s1482_s3 + $0x78] sm:$0xff] %v706_v47 }

// kernel: forward.5
= control target key start
LH: loop header
LB: loop body
LE: loop exit
PB: predicated region body
PF: predicated region fallthrough
CT: control target
= control target key end

     0   :  { %vm221_vm0 = vcmask 261120   ;;  %v1444_v20 = vmov 0   ;;  %s1827_s0 = inlined_call_operand.vmem [shape: bf16[4,288,128], index: 0, kind: input, shape index: {}]   ;;  %s1828_s1 = inlined_call_operand.vmem [shape: bf16[32,288], index: 1, kind: input, shape index: {}]   ;;  %s1829_s2 = inlined_call_operand.vmem [shape: f32[32,1], index: 2, kind: input, shape index: {}]   ;;  %s1830_s3 = inlined_call_operand.vmem [shape: f32[32,128], index: 3, kind: output, shape index: {}]  }
   0x1   :  { %v1368_v0 = vld [vmem:[%s1827_s0 + $0x38] sm:$0xff]  ;;  %v1378_v2 = vld [vmem:[%s1827_s0 + $0x88] sm:$0xff]  ;;  %v1367_v4 = vld [vmem:[%s1827_s0 + $0x30] sm:$0xff]  ;;  %1442 = vset.pattern.permute.xlu0 %v1444_v20  ;;  %1443 = vset.pattern.permute.xlu1 %v1444_v20 }
   0x2   :  { %v1376_v1 = vld [vmem:[%s1827_s0 + $0x78] sm:$0xff]  ;;  %v1386_v3 = vld [vmem:[%s1827_s0 + $0xc8] sm:$0xff]  ;;  %228 = vmatpush.bf16.msra.mxu0 %v1368_v0  ;;  %v1375_v5 = vld [vmem:[%s1827_s0 + $0x70] sm:$0xff]  ;;  %272 = vmatpush.bf16.msra.mxu2 %v1378_v2 }
   0x3   :  { %247 = vmatpush.bf16.msra.mxu1 %v1376_v1  ;;  %v1377_v6 = vld [vmem:[%s1827_s0 + $0x80] sm:$0xff]  ;;  %434 = vmatpush.bf16.msra.mxu3 %v1386_v3  ;;  %v937_v8 = vld [vmem:[%s1828_s1 + $0x8] sm:$0xf]  ;;  %v1357_v9 = vld [vmem:[%s1828_s1 + $0x10] sm:$0xf0] }
   0x4   :  { %v1385_v7 = vld [vmem:[%s1827_s0 + $0xc0] sm:$0xff]  ;;  %v1394_v10 = vld [vmem:[%s1827_s0 + $0x108] sm:$0xff]  ;;  %v1498_v11 = vor.u32 %v1357_v9, %v937_v8  ;;  %v1384_v14 = vld [vmem:[%s1827_s0 + $0xb8] sm:$0xff] }
   0x5   :  { %v1366_v12 = vld [vmem:[%s1827_s0 + $0x28] sm:$0xff]  ;;  %v1393_v15 = vld [vmem:[%s1827_s0 + $0x100] sm:$0xff]  ;;  %v1383_v18 = vld [vmem:[%s1827_s0 + $0xb0] sm:$0xff] }
   0x6   :  { %229 = vmatpush.bf16.msra.mxu0 %v1367_v4  ;;  %273 = vmatpush.bf16.msra.mxu2 %v1377_v6  ;;  %v1374_v13 = vld [vmem:[%s1827_s0 + $0x68] sm:$0xff]  ;;  %v1365_v16 = vld [vmem:[%s1827_s0 + $0x20] sm:$0xff]  ;;  %v1392_v19 = vld [vmem:[%s1827_s0 + $0xf8] sm:$0xff] }
   0x7   :  { %248 = vmatpush.bf16.msra.mxu1 %v1375_v5  ;;  %435 = vmatpush.bf16.msra.mxu3 %v1385_v7  ;;  %v1373_v17 = vld [vmem:[%s1827_s0 + $0x60] sm:$0xff]  ;;  %v1364_v21 = vld [vmem:[%s1827_s0 + $0x18] sm:$0xff]  ;;  %v1382_v23 = vld [vmem:[%s1827_s0 + $0xa8] sm:$0xff] }
   0x8   :  { %v1372_v22 = vld [vmem:[%s1827_s0 + $0x58] sm:$0xff]  ;;  %v1391_v24 = vld [vmem:[%s1827_s0 + $0xf0] sm:$0xff]  ;;  %v23_v25 = vld [vmem:[%s1829_s2] sm:$0xff] }
   0x9   :  { %1023 = vmatmul.msk.bf16.vlgmr.msra.gmra.mxu2 %vm221_vm0, %v1498_v11  ;;  %65 = vperm.xlu0 %1442, %v23_v25   ;;  %v1363_v26 = vld [vmem:[%s1827_s0 + $0x10] sm:$0xff]  ;;  %v1381_v28 = vld [vmem:[%s1827_s0 + $0xa0] sm:$0xff]  ;;  %v1360_v30 = vld [vmem:[%s1828_s1 + $0x28] sm:$0xf0] }
   0xa   :  { %453 = vmatpush.bf16.msrb.mxu2 %v1394_v10  ;;  %230 = vmatpush.bf16.msra.mxu0 %v1366_v12  ;;  %v1371_v27 = vld [vmem:[%s1827_s0 + $0x50] sm:$0xff]  ;;  %v949_v29 = vld [vmem:[%s1828_s1 + $0x20] sm:$0xf]  ;;  %v1390_v31 = vld [vmem:[%s1827_s0 + $0xe8] sm:$0xff] }
   0xb   :  { %249 = vmatpush.bf16.msra.mxu1 %v1374_v13  ;;  %436 = vmatpush.bf16.msra.mxu3 %v1384_v14  ;;  %v1559_v32 = vor.u32 %v1360_v30, %v949_v29  ;;  %v1362_v33 = vld [vmem:[%s1827_s0 + $0x8] sm:$0xff]  ;;  %v1380_v36 = vld [vmem:[%s1827_s0 + $0x98] sm:$0xff]  ;;  %v1389_v37 = vld [vmem:[%s1827_s0 + $0xe0] sm:$0xff] }
   0xc   :  { %v24_v34 = vld [vmem:[%s1829_s2 + $0x8] sm:$0xff]  ;;  %v1361_v38 = vld [vmem:[%s1827_s0] sm:$0xff]  ;;  %v25_v42 = vld [vmem:[%s1829_s2 + $0x10] sm:$0xff] }
   0xd   :  { %v1370_v35 = vld [vmem:[%s1827_s0 + $0x48] sm:$0xff]  ;;  %v1369_v39 = vld [vmem:[%s1827_s0 + $0x40] sm:$0xff]  ;;  %v1379_v43 = vld [vmem:[%s1827_s0 + $0x90] sm:$0xff]  ;;  %75 = vperm.xlu1 %1443, %v25_v42  }
   0xe   :  { %454 = vmatpush.bf16.msrb.mxu2 %v1393_v15  ;;  %231 = vmatpush.bf16.msra.mxu0 %v1365_v16  ;;  %v929_v40 = vld [vmem:[%s1828_s1] sm:$0xf]  ;;  %v1356_v41 = vld [vmem:[%s1828_s1 + $0x8] sm:$0xf0]  ;;  %v1355_v44 = vld [vmem:[%s1828_s1 + $0x4] sm:$0xf] }
   0xf   :  { %250 = vmatpush.bf16.msra.mxu1 %v1373_v17  ;;  %437 = vmatpush.bf16.msra.mxu3 %v1383_v18  ;;  %v931_v45 = vld [vmem:[%s1828_s1 + $0xc] sm:$0xf0]  ;;  %v1412_v46 = vld [vmem:[%s1827_s0 + $0x198] sm:$0xff]  ;;  %v1608_v48 = vor.u32 %v1356_v41, %v929_v40  ;;  %v1414_v55 = vld [vmem:[%s1827_s0 + $0x1a8] sm:$0xff] }
  0x10   :  { %v1388_v47 = vld [vmem:[%s1827_s0 + $0xd8] sm:$0xff]  ;;  %v1613_v50 = vor.u32 %v1355_v44, %v931_v45  ;;  %v1411_v52 = vld [vmem:[%s1827_s0 + $0x190] sm:$0xff]  ;;  %v1410_v58 = vld [vmem:[%s1827_s0 + $0x188] sm:$0xff] }
  0x11   :  { %70 = vperm.xlu0 %1442, %v24_v34   ;;  %v1404_v49 = vld [vmem:[%s1827_s0 + $0x158] sm:$0xff]  ;;  %v1387_v53 = vld [vmem:[%s1827_s0 + $0xd0] sm:$0xff]  ;;  %v1422_v59 = vld [vmem:[%s1827_s0 + $0x1e8] sm:$0xff] }
  0x12   :  { %455 = vmatpush.bf16.msrb.mxu2 %v1392_v19  ;;  %232 = vmatpush.bf16.msra.mxu0 %v1364_v21  ;;  %v1396_v51 = vld [vmem:[%s1827_s0 + $0x118] sm:$0xff]  ;;  %v1403_v54 = vld [vmem:[%s1827_s0 + $0x150] sm:$0xff]  ;;  %v1402_v60 = vld [vmem:[%s1827_s0 + $0x148] sm:$0xff] }
  0x13   :  { %251 = vmatpush.bf16.msra.mxu1 %v1372_v22  ;;  %438 = vmatpush.bf16.msra.mxu3 %v1382_v23  ;;  %v1395_v56 = vld [vmem:[%s1827_s0 + $0x110] sm:$0xff]  ;;  %v26_v57 = vld [vmem:[%s1829_s2 + $0x18] sm:$0xff]  ;;  %v1413_v61 = vld [vmem:[%s1827_s0 + $0x1a0] sm:$0xff] }
  0x14   :  { %v1409_v62 = vld [vmem:[%s1827_s0 + $0x180] sm:$0xff]  ;;  %v941_v1 = vld [vmem:[%s1828_s1 + $0x18] sm:$0xf]  ;;  %v1358_v3 = vld [vmem:[%s1828_s1 + $0x1c] sm:$0xf] }
  0x15   :  { %80 = vperm.xlu1 %1443, %v26_v57   ;;  %v1421_v63 = vld [vmem:[%s1827_s0 + $0x1e0] sm:$0xff]  ;;  %v943_v4 = vld [vmem:[%s1828_s1 + $0x24] sm:$0xf0]  ;;  %v1408_v5 = vld [vmem:[%s1827_s0 + $0x178] sm:$0xff] }
  0x16   :  { %456 = vmatpush.bf16.msrb.mxu2 %v1391_v24  ;;  %233 = vmatpush.bf16.msra.mxu0 %v1363_v26  ;;  %v1401_v0 = vld [vmem:[%s1827_s0 + $0x140] sm:$0xff]  ;;  %v1420_v6 = vld [vmem:[%s1827_s0 + $0x1d8] sm:$0xff]  ;;  %v1684_v9 = vor.u32 %v1358_v3, %v943_v4  ;;  %v1407_v10 = vld [vmem:[%s1827_s0 + $0x170] sm:$0xff] }
  0x17   :  { %252 = vmatpush.bf16.msra.mxu1 %v1371_v27  ;;  %439 = vmatpush.bf16.msra.mxu3 %v1381_v28  ;;  %v1359_v2 = vld [vmem:[%s1828_s1 + $0x20] sm:$0xf0]  ;;  %v1400_v8 = vld [vmem:[%s1827_s0 + $0x138] sm:$0xff]  ;;  %v1419_v12 = vld [vmem:[%s1827_s0 + $0x1d0] sm:$0xff] }
  0x18   :  { %v1679_v7 = vor.u32 %v1359_v2, %v941_v1  ;;  %v1399_v13 = vld [vmem:[%s1827_s0 + $0x130] sm:$0xff]  ;;  %v1406_v14 = vld [vmem:[%s1827_s0 + $0x168] sm:$0xff]  ;;  %v1405_v17 = vld [vmem:[%s1827_s0 + $0x160] sm:$0xff] }
  0x19   :  { %1024 = vmatmul.msk.bf16.gmra.mxu2 %vm221_vm0, %v1559_v32  ;;  %v1418_v15 = vld [vmem:[%s1827_s0 + $0x1c8] sm:$0xff]  ;;  %v1417_v18 = vld [vmem:[%s1827_s0 + $0x1c0] sm:$0xff]  ;;  %v1432_v20 = vld [vmem:[%s1827_s0 + $0x238] sm:$0xff] }
  0x1a   :  { %457 = vmatpush.bf16.msrb.mxu2 %v1390_v31  ;;  %234 = vmatpush.bf16.msra.mxu0 %v1362_v33  ;;  %v1398_v16 = vld [vmem:[%s1827_s0 + $0x128] sm:$0xff]  ;;  %v1397_v19 = vld [vmem:[%s1827_s0 + $0x120] sm:$0xff]  ;;  %v1416_v22 = vld [vmem:[%s1827_s0 + $0x1b8] sm:$0xff] }
  0x1b   :  { %253 = vmatpush.bf16.msra.mxu1 %v1370_v35  ;;  %440 = vmatpush.bf16.msra.mxu3 %v1380_v36  ;;  %v1430_v21 = vld [vmem:[%s1827_s0 + $0x228] sm:$0xff]  ;;  %v1431_v23 = vld [vmem:[%s1827_s0 + $0x230] sm:$0xff]  ;;  %v1429_v24 = vld [vmem:[%s1827_s0 + $0x220] sm:$0xff] }
  0x1c   :  { %v1415_v25 = vld [vmem:[%s1827_s0 + $0x1b0] sm:$0xff]  ;;  %v1428_v26 = vld [vmem:[%s1827_s0 + $0x218] sm:$0xff]  ;;  %v1426_v28 = vld [vmem:[%s1827_s0 + $0x208] sm:$0xff] }
  0x1d   :  { %v1427_v27 = vld [vmem:[%s1827_s0 + $0x210] sm:$0xff]  ;;  %v1425_v29 = vld [vmem:[%s1827_s0 + $0x200] sm:$0xff]  ;;  %v1424_v30 = vld [vmem:[%s1827_s0 + $0x1f8] sm:$0xff] }
  0x1e   :  { %458 = vmatpush.bf16.msrb.mxu2 %v1389_v37  ;;  %235 = vmatpush.bf16.msra.mxu0 %v1361_v38  ;;  %v1423_v31 = vld [vmem:[%s1827_s0 + $0x1f0] sm:$0xff] }
  0x1f   :  { %254 = vmatpush.bf16.msra.mxu1 %v1369_v39  ;;  %441 = vmatpush.bf16.msra.mxu3 %v1379_v43 }
  0x21   :  { %236 = vmatmul.bf16.vlgmr.msra.gmra.mxu0 %v1608_v48 }
  0x22   :  { %459 = vmatpush.bf16.msrb.mxu2 %v1388_v47  ;;  %255 = vmatmul.bf16.vlgmr.msra.gmra.mxu1 %v1613_v50 }
  0x23   :  { %663 = vmatpush.bf16.msrb.mxu3 %v1412_v46  ;;  %644 = vmatpush.bf16.msrb.mxu1 %v1404_v49 }
  0x24   :  { %442 = vmatmul.bf16.vlgmr.msra.gmra.mxu3 %v1608_v48  ;;  %478 = vmatpush.bf16.msrb.mxu0 %v1396_v51 }
  0x26   :  { %460 = vmatpush.bf16.msrb.mxu2 %v1387_v53 }
  0x27   :  { %664 = vmatpush.bf16.msrb.mxu3 %v1411_v52  ;;  %645 = vmatpush.bf16.msrb.mxu1 %v1403_v54 }
  0x28   :  { %479 = vmatpush.bf16.msrb.mxu0 %v1395_v56 }
  0x29   :  { %461 = vmatmul.bf16.vlgmr.msrb.gmra.mxu2 %v1613_v50 }
  0x2a   :  { %688 = vmatpush.bf16.msra.mxu2 %v1414_v55 }
  0x2b   :  { %665 = vmatpush.bf16.msrb.mxu3 %v1410_v58  ;;  %646 = vmatpush.bf16.msrb.mxu1 %v1402_v60 }
  0x2c   :  { %850 = vmatpush.bf16.msra.mxu0 %v1422_v59 }
  0x2e   :  { %689 = vmatpush.bf16.msra.mxu2 %v1413_v61 }
  0x2f   :  { %666 = vmatpush.bf16.msrb.mxu3 %v1409_v62  ;;  %647 = vmatpush.bf16.msrb.mxu1 %v1401_v0 }
  0x30   :  { %851 = vmatpush.bf16.msra.mxu0 %v1421_v63 }
  0x31   :  { %241 = vmatmul.bf16.gmra.mxu0 %v1679_v7 }
  0x32   :  { %1433 = vmatpush.bf16.msrb.mxu2 %v1422_v59  ;;  %260 = vmatmul.bf16.gmra.mxu1 %v1684_v9 }
  0x33   :  { %667 = vmatpush.bf16.msrb.mxu3 %v1408_v5  ;;  %648 = vmatpush.bf16.msrb.mxu1 %v1400_v8 }
  0x34   :  { %852 = vmatpush.bf16.msra.mxu0 %v1420_v6  ;;  %447 = vmatmul.bf16.gmra.mxu3 %v1679_v7 }
  0x36   :  { %1434 = vmatpush.bf16.msrb.mxu2 %v1421_v63 }
  0x37   :  { %668 = vmatpush.bf16.msrb.mxu3 %v1407_v10  ;;  %649 = vmatpush.bf16.msrb.mxu1 %v1399_v13 }
  0x38   :  { %853 = vmatpush.bf16.msra.mxu0 %v1419_v12 }
  0x39   :  { %466 = vmatmul.bf16.gmra.mxu2 %v1684_v9 }
  0x3a   :  { %1435 = vmatpush.bf16.msrb.mxu2 %v1420_v6 }
  0x3b   :  { %669 = vmatpush.bf16.msrb.mxu3 %v1406_v14  ;;  %650 = vmatpush.bf16.msrb.mxu1 %v1398_v16 }
  0x3c   :  { %854 = vmatpush.bf16.msra.mxu0 %v1418_v15 }
  0x3e   :  { %1436 = vmatpush.bf16.msrb.mxu2 %v1419_v12 }
  0x3f   :  { %670 = vmatpush.bf16.msrb.mxu3 %v1405_v17  ;;  %651 = vmatpush.bf16.msrb.mxu1 %v1397_v19 }
  0x40   :  { %855 = vmatpush.bf16.msra.mxu0 %v1417_v18 }
  0x41   :  { %1133 = vmatmul.msk.bf16.vlgmr.msrb.gmra.mxu0 %vm221_vm0, %v1498_v11 }
  0x42   :  { %1437 = vmatpush.bf16.msrb.mxu2 %v1418_v15  ;;  %652 = vmatmul.bf16.vlgmr.msrb.gmra.mxu1 %v1608_v48 }
  0x43   :  { %894 = vmatpush.bf16.msra.mxu3 %v1432_v20  ;;  %869 = vmatpush.bf16.msra.mxu1 %v1430_v21 }
  0x44   :  { %856 = vmatpush.bf16.msra.mxu0 %v1416_v22  ;;  %671 = vmatmul.bf16.vlgmr.msrb.gmra.mxu3 %v1613_v50 }
  0x46   :  { %1438 = vmatpush.bf16.msrb.mxu2 %v1417_v18 }
  0x47   :  { %895 = vmatpush.bf16.msra.mxu3 %v1431_v23  ;;  %870 = vmatpush.bf16.msra.mxu1 %v1429_v24 }
  0x48   :  { %857 = vmatpush.bf16.msra.mxu0 %v1415_v25 }
  0x49   :  { %1243 = vmatmul.msk.bf16.vlgmr.msra.gmra.mxu2 %vm221_vm0, %v1498_v11 }
  0x4a   :  { %1439 = vmatpush.bf16.msrb.mxu2 %v1416_v22 }
  0x4b   :  { %871 = vmatpush.bf16.msra.mxu1 %v1428_v26 }
  0x4e   :  { %1440 = vmatpush.bf16.msrb.mxu2 %v1415_v25 }
  0x4f   :  { %872 = vmatpush.bf16.msra.mxu1 %v1427_v27 }
  0x51   :  { %1134 = vmatmul.msk.bf16.gmra.mxu0 %vm221_vm0, %v1559_v32 }
  0x52   :  { %657 = vmatmul.bf16.gmra.mxu1 %v1679_v7 }
  0x53   :  { %873 = vmatpush.bf16.msra.mxu1 %v1426_v28 }
  0x54   :  { %676 = vmatmul.bf16.gmra.mxu3 %v1684_v9 }
  0x57   :  { %874 = vmatpush.bf16.msra.mxu1 %v1425_v29 }
  0x59   :  { %1244 = vmatmul.msk.bf16.gmra.mxu2 %vm221_vm0, %v1559_v32 }
  0x5b   :  { %875 = vmatpush.bf16.msra.mxu1 %v1424_v30 }
  0x5f   :  { %876 = vmatpush.bf16.msra.mxu1 %v1423_v31 }
  0x61   :  { %858 = vmatmul.bf16.vlgmr.msra.gmra.mxu0 %v1608_v48 }
  0x62   :  { %877 = vmatmul.bf16.vlgmr.msra.gmra.mxu1 %v1613_v50 }
  0x64   :  { %1353 = vmatmul.msk.bf16.vlgmr.msra.gmra.mxu3 %vm221_vm0, %v1498_v11 }
  0x69   :  { %863 = vmatmul.bf16.vlgmr.msrb.gmra.mxu2 %v1679_v7 }
  0x72   :  { %882 = vmatmul.bf16.gmra.mxu1 %v1684_v9 }
  0x74   :  { %1354 = vmatmul.msk.bf16.gmra.mxu3 %vm221_vm0, %v1559_v32 }
  0x7b   :  { %v66_v35 = vpop.permute.xlu0 %65 }
  0x7f   :  { %v1778_v32 = vpop.permute.xlu1 %75 }
  0x83   :  { %v1775_v42 = vpop.permute.xlu0 %70 }
  0x87   :  { %v1785_v56 = vpop.permute.xlu1 %80 }
  0x8c   :  { %v275_v33 = vpop.f32.mrf.mxu2 }
  0x94   :  { %v277_v34 = vpop.f32.mrf.mxu2 }
  0x9c   :  { %v280_v36 = vpop.f32.mrf.mxu2 }
  0x9e   :  { %v237_v37 = vpop.f32.mrf.mxu0 }
  0x9f   :  { %v238_v38 = vadd.f32 %v237_v37, %v66_v35  ;;  %v256_v39 = vpop.f32.mrf.mxu1 }
  0xa1   :  { %v257_v40 = vadd.f32 %v256_v39, %v238_v38 }
  0xa3   :  { %v1773_v41 = vadd.f32 %v275_v33, %v257_v40 }
  0xa4   :  { %v282_v11 = vpop.f32.mrf.mxu2 }
  0xa5   :  { %v285_v37 = vmax.f32 %v1773_v41, 0.0 }
  0xa6   :  { %v239_v44 = vpop.f32.mrf.mxu0 }
  0xa7   :  { %v443_v43 = vpop.f32.mrf.mxu3  ;;  %v240_v45 = vadd.f32 %v239_v44, %v1775_v42  ;;  %v258_v46 = vpop.f32.mrf.mxu1 }
  0xa8   :  { %v444_v19 = vadd.f32 %v443_v43, %v66_v35 }
  0xa9   :  { %v259_v47 = vadd.f32 %v258_v46, %v240_v45 }
  0xab   :  { %v1780_v48 = vadd.f32 %v277_v34, %v259_v47 }
  0xac   :  { %v462_v50 = vpop.f32.mrf.mxu2 }
  0xad   :  { %v463_v24 = vadd.f32 %v462_v50, %v444_v19 }
  0xae   :  { %v242_v51 = vpop.f32.mrf.mxu0 }
  0xaf   :  { %v445_v49 = vpop.f32.mrf.mxu3  ;;  %v243_v52 = vadd.f32 %v242_v51, %v1778_v32  ;;  %v261_v53 = vpop.f32.mrf.mxu1 }
  0xb0   :  { %v446_v29 = vadd.f32 %v445_v49, %v1775_v42 }
  0xb1   :  { %v262_v54 = vadd.f32 %v261_v53, %v243_v52 }
  0xb3   :  { %v1783_v55 = vadd.f32 %v280_v36, %v262_v54 }
  0xb4   :  { %v464_v58 = vpop.f32.mrf.mxu2 }
  0xb5   :  { %v465_v38 = vadd.f32 %v464_v58, %v446_v29 }
  0xb6   :  { %v244_v59 = vpop.f32.mrf.mxu0 }
  0xb7   :  { %v448_v57 = vpop.f32.mrf.mxu3  ;;  %v245_v60 = vadd.f32 %v244_v59, %v1785_v56  ;;  %v263_v61 = vpop.f32.mrf.mxu1 }
  0xb8   :  { %v449_v41 = vadd.f32 %v448_v57, %v1778_v32 }
  0xb9   :  { %v264_v62 = vadd.f32 %v263_v61, %v245_v60  ;;  %v286_v60 = vmax.f32 %v1780_v48, 0.0 }
  0xbb   :  { %v1788_v63 = vadd.f32 %v282_v11, %v264_v62 }
  0xbc   :  { %v467_v1 = vpop.f32.mrf.mxu2 }
  0xbd   :  { %v468_v62 = vadd.f32 %v467_v1, %v449_v41  ;;  %v287_v1 = vmax.f32 %v1783_v55, 0.0 }
  0xbe   :  { %v481_v2 = vpop.f32.mrf.mxu0 }
  0xbf   :  { %v1790_v0 = vpop.f32.mrf.mxu3  ;;  %v653_v3 = vpop.f32.mrf.mxu1  ;;  %v482_v25 = vadd.f32 %v481_v2, %v463_v24 }
  0xc0   :  { %v654_v20 = vadd.f32 %v653_v3, %v66_v35 }
  0xc1   :  { %v491_v33 = vmax.f32 %v482_v25, 0.0 }
  0xc3   :  { %v495_v45 = vmax.f32 %v285_v37, %v491_v33 }
  0xc4   :  { %v1792_v4 = vpop.f32.mrf.mxu2 }
  0xc6   :  { %v483_v6 = vpop.f32.mrf.mxu0 }
  0xc7   :  { %v672_v5 = vpop.f32.mrf.mxu3  ;;  %v655_v7 = vpop.f32.mrf.mxu1  ;;  %v484_v44 = vadd.f32 %v483_v6, %v465_v38 }
  0xc8   :  { %v673_v26 = vadd.f32 %v672_v5, %v654_v20  ;;  %v656_v40 = vadd.f32 %v655_v7, %v1775_v42 }
  0xc9   :  { %v492_v52 = vmax.f32 %v484_v44, 0.0 }
  0xcb   :  { %v496_v5 = vmax.f32 %v286_v60, %v492_v52 }
  0xcc   :  { %v691_v9 = vpop.f32.mrf.mxu2 }
  0xcd   :  { %v692_v28 = vadd.f32 %v691_v9, %v673_v26 }
  0xce   :  { %v486_v10 = vpop.f32.mrf.mxu0 }
  0xcf   :  { %v674_v8 = vpop.f32.mrf.mxu3  ;;  %v658_v12 = vpop.f32.mrf.mxu1  ;;  %v487_v6 = vadd.f32 %v486_v10, %v468_v62 }
  0xd0   :  { %v675_v46 = vadd.f32 %v674_v8, %v656_v40  ;;  %v659_v58 = vadd.f32 %v658_v12, %v1778_v32 }
  0xd4   :  { %v693_v14 = vpop.f32.mrf.mxu2 }
  0xd5   :  { %v694_v49 = vadd.f32 %v693_v14, %v675_v46  ;;  %v451_v14 = vadd.f32 %v1790_v0, %v1785_v56 }
  0xd6   :  { %v1794_v15 = vpop.f32.mrf.mxu0 }
  0xd7   :  { %v677_v13 = vpop.f32.mrf.mxu3  ;;  %v660_v16 = vpop.f32.mrf.mxu1  ;;  %v702_v2 = vmax.f32 %v694_v49, 0.0  ;;  %v470_v10 = vadd.f32 %v1792_v4, %v451_v14 }
  0xd8   :  { %v678_v7 = vadd.f32 %v677_v13, %v659_v58  ;;  %v661_v13 = vadd.f32 %v660_v16, %v1785_v56 }
  0xd9   :  { %v489_v24 = vadd.f32 %v1794_v15, %v470_v10 }
  0xdb   :  { %v494_v55 = vmax.f32 %v489_v24, 0.0 }
  0xdc   :  { %v696_v18 = vpop.f32.mrf.mxu2 }
  0xdd   :  { %v697_v9 = vadd.f32 %v696_v18, %v678_v7 }
  0xde   :  { %v859_v21 = vpop.f32.mrf.mxu0 }
  0xdf   :  { %v1796_v17 = vpop.f32.mrf.mxu3  ;;  %v860_v22 = vadd.f32 %v859_v21, %v66_v35  ;;  %v878_v23 = vpop.f32.mrf.mxu1  ;;  %v701_v35 = vmax.f32 %v692_v28, 0.0  ;;  %v703_v21 = vmax.f32 %v697_v9, 0.0 }
  0xe0   :  { %v680_v25 = vadd.f32 %v1796_v17, %v661_v13 }
  0xe1   :  { %v879_v27 = vadd.f32 %v878_v23, %v860_v22 }
  0xe4   :  { %v698_v30 = vpop.f32.mrf.mxu2 }
  0xe6   :  { %v861_v36 = vpop.f32.mrf.mxu0 }
  0xe7   :  { %v897_v31 = vpop.f32.mrf.mxu3  ;;  %v880_v39 = vpop.f32.mrf.mxu1  ;;  %v862_v43 = vadd.f32 %v861_v36, %v1775_v42 }
  0xe8   :  { %v898_v34 = vadd.f32 %v897_v31, %v879_v27  ;;  %v699_v27 = vadd.f32 %v698_v30, %v680_v25 }
  0xe9   :  { %v881_v51 = vadd.f32 %v880_v39, %v862_v43 }
  0xea   :  { %v907_v11 = vmax.f32 %v898_v34, 0.0  ;;  %v704_v16 = vmax.f32 %v699_v27, 0.0 }
  0xec   :  { %v911_v47 = vmax.f32 %v701_v35, %v907_v11  ;;  %v864_v53 = vpop.f32.mrf.mxu2 }
  0xed   :  { %v865_v42 = vadd.f32 %v864_v53, %v1778_v32  ;;  %v493_v32 = vmax.f32 %v487_v6, 0.0 }
  0xee   :  { %v915_v50 = vmax.f32 %v495_v45, %v911_v47 }
  0xef   :  { %v899_v54 = vpop.f32.mrf.mxu3  ;;  %v883_v61 = vpop.f32.mrf.mxu1  ;;  %v497_v0 = vmax.f32 %v287_v1, %v493_v32 }
  0xf0   :  { %919 = vst [vmem:[%s1830_s3] sm:$0xff] %v915_v50  ;;  %v900_v59 = vadd.f32 %v899_v54, %v881_v51  ;;  %v884_v57 = vadd.f32 %v883_v61, %v865_v42 }
  0xf2   :  { %v908_v3 = vmax.f32 %v900_v59, 0.0 }
  0xf4   :  { %v912_v8 = vmax.f32 %v702_v2, %v908_v3  ;;  %v866_v19 = vpop.f32.mrf.mxu2 }
  0xf5   :  { %v867_v18 = vadd.f32 %v866_v19, %v1785_v56  ;;  %v288_v56 = vmax.f32 %v1788_v63, 0.0 }
  0xf6   :  { %v916_v12 = vmax.f32 %v496_v5, %v912_v8 }
  0xf7   :  { %v902_v20 = vpop.f32.mrf.mxu3  ;;  %v885_v23 = vpop.f32.mrf.mxu1  ;;  %v498_v34 = vmax.f32 %v288_v56, %v494_v55 }
  0xf8   :  { %920 = vst [vmem:[%s1830_s3 + $0x8] sm:$0xff] %v916_v12  ;;  %v903_v48 = vadd.f32 %v902_v20, %v884_v57  ;;  %v886_v29 = vadd.f32 %v885_v23, %v867_v18 }
  0xfa   :  { %v909_v22 = vmax.f32 %v903_v48, 0.0 }
  0xfc   :  { %v913_v26 = vmax.f32 %v703_v21, %v909_v22 }
  0xfe   :  { %v917_v28 = vmax.f32 %v497_v0, %v913_v26 }
  0xff   :  { %v904_v31 = vpop.f32.mrf.mxu3 }
 0x100   :  { %921 = vst [vmem:[%s1830_s3 + $0x10] sm:$0xff] %v917_v28  ;;  %v905_v4 = vadd.f32 %v904_v31, %v886_v29 }
 0x102   :  { %v910_v33 = vmax.f32 %v905_v4, 0.0 }
 0x104   :  { %v914_v36 = vmax.f32 %v704_v16, %v910_v33 }
 0x106   :  { %v918_v15 = vmax.f32 %v498_v34, %v914_v36 }
 0x108   :  { %922 = vst [vmem:[%s1830_s3 + $0x18] sm:$0xff] %v918_v15 }

</bundles_post_ra>
